<compile_context>
chip_gen: v6e
topology: v6e:2x2x1
jax: 0.10.0
libtpu: 0.0.40
codegen_flags: <defaults>
</compile_context>

<pallas_src>
import functools
import math

import jax
import jax.numpy as jnp
from jax.experimental import pallas as pl
from jax.experimental.pallas import tpu as pltpu

_WEIGHT_KEYS = ("w1", "b1", "w2", "b2", "w3", "b3", "wo", "bo")


def _round_up(v, m):
    return ((v + m - 1) // m) * m


def _vmem_capacity_bytes():
    try:
        return int(pltpu.get_tpu_info().vmem_capacity_bytes)
    except Exception:
        # TODO(synk): query failed; assume v5e/v6e physical VMEM (v7x has 64 MiB).
        return 128 << 20


def _pick_hw_tile(HW, cap=2048):
    """Largest 128-multiple divisor of HW up to `cap`; else stream the whole HW."""
    if HW <= cap:
        return HW
    t = (cap // 128) * 128
    while t >= 128:
        if HW % t == 0:
            return t
        t -= 128
    return HW  # TODO(synk): HW has no 128-multiple divisor; stream it whole (no pad).


def _pick_batch_tile(B, C, hw_t, n_pad, x_itemsize, avail_bytes, bt_target):
    """Largest batch tile (<= bt_target) whose per-step VMEM footprint fits avail_bytes."""
    # double-buffered x tile + double-buffered (lane-padded) output tile + pooled scratch
    per_row = 2 * C * hw_t * x_itemsize + 2 * n_pad * 4 + C * 4
    if B <= bt_target and B * per_row <= avail_bytes:
        return B  # whole batch in one tile; the HW grid axis still provides pipelining
    bt = max(8, (min(bt_target, B) // 8) * 8)  # partial batch tiles need 8-row alignment
    while bt > 8 and bt * per_row > avail_bytes:
        bt -= 8
    return bt


def _head_kernel(x_ref, w1_ref, b1_ref, w2_ref, b2_ref, w3_ref, b3_ref,
                 wo_ref, bo_ref, o_ref, pooled_ref, *, act, inv_hw, num_classes):
    hw = pl.program_id(1)

    @pl.when(hw == 0)
    def _():
        pooled_ref[...] = jnp.zeros_like(pooled_ref)

    # Global-average-pool partial sum over this spatial chunk (f32 accumulation).
    # x tile is (bt, C, hw_tile); the lane-axis reduce goes to the XLU (free, HBM-bound).
    pooled_ref[...] += jnp.sum(x_ref[...].astype(jnp.float32), axis=-1)

    @pl.when(hw == pl.num_programs(1) - 1)
    def _():
        cdt = w1_ref.dtype                      # MXU operand dtype (bf16 or f32)
        pooled = pooled_ref[...] * inv_hw       # exact mean in f32

        def fc(h, w_ref, b_ref):
            # bf16 (or f32) operands, f32 accumulation; bias-add stays f32.
            return jnp.dot(h.astype(cdt), w_ref[...],
                           preferred_element_type=jnp.float32) + b_ref[...]

        def relu6(v):
            return jnp.clip(v, 0.0, 6.0)

        # fc_1 -> drop (identity, eval) -> ReLU6 -> fc_2 -> ... -> fc_out -> last_act
        h = relu6(fc(pooled, w1_ref, b1_ref))
        h = relu6(fc(h, w2_ref, b2_ref))
        h = relu6(fc(h, w3_ref, b3_ref))
        h = fc(h, wo_ref, bo_ref)

        if act == "softmax":
            # fc_out's output dim is lane-padded to a multiple of 128: mask pad lanes.
            lane = jax.lax.broadcasted_iota(jnp.int32, h.shape, 1)
            h = jnp.where(lane < num_classes, h, -1e30)
            h = jax.nn.softmax(h, axis=-1)
        elif act == "sigmoid":
            h = jax.nn.sigmoid(h)
        elif act == "relu":
            h = jnp.maximum(h, 0.0)
        elif act in (None, "none", "identity"):
            pass
        else:
            # TODO(synk): get_act() source not provided; extend mapping if needed.
            raise ValueError(f"unsupported act: {act}")

        o_ref[...] = h.astype(o_ref.dtype)


def prepare_params(params, compute_dtype=jnp.bfloat16):
    """One-time transform: cast weights to compute dtype, biases to f32 (1, N),
    and zero-pad fc_out's output dim to a multiple of 128 (lane-dense output)."""
    num_classes = params["wo"].shape[1]
    n_pad = _round_up(max(num_classes, 1), 128)
    wo = jnp.zeros((params["wo"].shape[0], n_pad), jnp.float32)
    wo = wo.at[:, :num_classes].set(params["wo"].astype(jnp.float32))
    bo = jnp.zeros((1, n_pad), jnp.float32)
    bo = bo.at[:, :num_classes].set(params["bo"].reshape(1, -1).astype(jnp.float32))
    p = {
        "w1": params["w1"].astype(compute_dtype),
        "w2": params["w2"].astype(compute_dtype),
        "w3": params["w3"].astype(compute_dtype),
        "wo": wo.astype(compute_dtype),
        "b1": params["b1"].reshape(1, -1).astype(jnp.float32),
        "b2": params["b2"].reshape(1, -1).astype(jnp.float32),
        "b3": params["b3"].reshape(1, -1).astype(jnp.float32),
        "bo": bo,
    }
    return p, num_classes, n_pad


def classification_head_simple(x, params, *, act="sigmoid",
                               compute_dtype=jnp.bfloat16,
                               bt_target=256, hw_tile=None,
                               single_buffer_weights=True):
    """x: (B, C, *spatial) NCHW / NCDHW (covers the module's '2d' and '3d' modes).
    params: dict of transposed linear weights (in, out) and biases."""
    B, C = x.shape[0], x.shape[1]
    HW = math.prod(x.shape[2:])
    # Reshape only -- spatial dims are contiguous, so no extra HBM transpose pass.
    x3 = x.reshape(B, C, HW)
    x_itemsize = jnp.dtype(x3.dtype).itemsize

    p, num_classes, n_pad = prepare_params(params, compute_dtype)

    hw_t = hw_tile if hw_tile is not None else _pick_hw_tile(HW)
    assert hw_t == HW or (hw_t % 128 == 0 and HW % hw_t == 0), "bad hw_tile"

    weight_bytes = sum(int(p[k].size) * jnp.dtype(p[k].dtype).itemsize
                       for k in _WEIGHT_KEYS)
    vmem_cap = _vmem_capacity_bytes()
    budget = int(vmem_cap * 0.8)          # ~102 MiB on v5e/v6e, ~51 MiB on v7x
    avail = max(budget - 2 * weight_bytes - (4 << 20), 4 << 20)
    bt = _pick_batch_tile(B, C, hw_t, n_pad, x_itemsize, avail, bt_target)

    grid = (pl.cdiv(B, bt), pl.cdiv(HW, hw_t))

    x_tile_bytes = bt * C * hw_t * x_itemsize
    out_tile_bytes = bt * n_pad * 4
    needed = (2 * weight_bytes + 2 * x_tile_bytes + 2 * out_tile_bytes
              + bt * C * 4 + (4 << 20))
    vmem_limit = int(min(max(needed, 32 << 20), int(vmem_cap * 0.9)))

    kernel = functools.partial(_head_kernel, act=act,
                               inv_hw=1.0 / float(HW), num_classes=num_classes)
    const_map = lambda i, j: (0, 0)   # weights/biases: DMA'd once, VMEM-resident

    def run(single_buffer):
        if single_buffer:
            # Constant-index blocks never change: single-buffer them to halve their VMEM.
            w_specs = [pl.BlockSpec(p[k].shape, const_map,
                                    pipeline_mode=pl.Buffered(buffer_count=1))
                       for k in _WEIGHT_KEYS]
        else:
            w_specs = [pl.BlockSpec(p[k].shape, const_map) for k in _WEIGHT_KEYS]
        return pl.pallas_call(
            kernel,
            out_shape=jax.ShapeDtypeStruct((B, n_pad), jnp.float32),
            grid=grid,
            in_specs=[pl.BlockSpec((bt, C, hw_t), lambda i, j: (i, 0, j))] + w_specs,
            out_specs=pl.BlockSpec((bt, n_pad), lambda i, j: (i, 0)),
            scratch_shapes=[pltpu.VMEM((bt, C), jnp.float32)],   # pooled-sum accumulator
            compiler_params=pltpu.CompilerParams(
                dimension_semantics=("parallel", "arbitrary"),   # batch sharded on v7x TCs
                vmem_limit_bytes=vmem_limit,
            ),
        )(x3, *[p[k] for k in _WEIGHT_KEYS])

    if single_buffer_weights:
        try:
            out_pad = run(True)
        except Exception:
            # TODO(synk): pipeline_mode=pl.Buffered(1) unsupported on this jax version;
            # fall back to default (double-buffered) constant weight blocks.
            out_pad = run(False)
    else:
        out_pad = run(False)

    return out_pad[:, :num_classes]


def _init_linear(key, fan_in, fan_out):
    """PyTorch nn.Linear default init, returned in (in, out) layout."""
    kw, kb = jax.random.split(key)
    bound = 1.0 / math.sqrt(fan_in)
    w = jax.random.uniform(kw, (fan_in, fan_out), jnp.float32, -bound, bound)
    b = jax.random.uniform(kb, (fan_out,), jnp.float32, -bound, bound)
    return w, b


def make_params(key, in_channels, num_classes):
    k1, k2, k3, k4 = jax.random.split(key, 4)
    w1, b1 = _init_linear(k1, in_channels, in_channels * 2)
    w2, b2 = _init_linear(k2, in_channels * 2, in_channels)
    w3, b3 = _init_linear(k3, in_channels, in_channels // 2)
    wo, bo = _init_linear(k4, in_channels // 2, num_classes)
    return {"w1": w1, "b1": b1, "w2": w2, "b2": b2,
            "w3": w3, "b3": b3, "wo": wo, "bo": bo}


if __name__ == "__main__":
    key = jax.random.PRNGKey(0)
    k_x, k_p = jax.random.split(key)

    B, C, H, W = 2, 4, 16, 16
    num_classes = 3

    x = jax.random.normal(k_x, (B, C, H, W), jnp.float32)
    params = make_params(k_p, C, num_classes)

    # Plain-JAX reference (same math as the PyTorch module in eval mode).
    pooled = jnp.mean(x.reshape(B, C, H * W), axis=-1)
    h = jnp.clip(pooled @ params["w1"] + params["b1"], 0.0, 6.0)
    h = jnp.clip(h @ params["w2"] + params["b2"], 0.0, 6.0)
    h = jnp.clip(h @ params["w3"] + params["b3"], 0.0, 6.0)
    logits = h @ params["wo"] + params["bo"]
    ref_sig = jax.nn.sigmoid(logits)
    ref_sm = jax.nn.softmax(logits, axis=-1)

    # Exact-path check (f32 weights); hw_tile=128 < HW=256 exercises the pooled-accumulator
    # grid axis (zero at hw==0, finalize at hw==last).
    out_f32 = jax.block_until_ready(classification_head_simple(
        x, params, act="sigmoid", compute_dtype=jnp.float32, hw_tile=128))
    assert out_f32.shape == (B, num_classes)
    assert jnp.allclose(out_f32, ref_sig, atol=1e-5, rtol=1e-5)

    # Softmax path exercises the lane-padding mask on the padded fc_out output.
    out_sm = jax.block_until_ready(classification_head_simple(
        x, params, act="softmax", compute_dtype=jnp.float32, hw_tile=128))
    assert jnp.allclose(out_sm, ref_sm, atol=1e-5, rtol=1e-5)

    # Default bf16 weight / MXU path (f32 accumulation): loose tolerance.
    out_bf16 = jax.block_until_ready(classification_head_simple(x, params, act="sigmoid"))
    assert jnp.allclose(out_bf16, ref_sig, atol=2e-2, rtol=2e-2)

    print("KERNEL_OK")
</pallas_src>

<mosaic_0001>
module attributes {stable_mosaic.version = 11 : i64} {
  func.func @_head_kernel(%arg0: i32, %arg1: i32, %arg2: memref<2x4x128xf32, #tpu.memory_space<vmem>>, %arg3: memref<4x8xf32, #tpu.memory_space<vmem>>, %arg4: memref<1x8xf32, #tpu.memory_space<vmem>>, %arg5: memref<8x4xf32, #tpu.memory_space<vmem>>, %arg6: memref<1x4xf32, #tpu.memory_space<vmem>>, %arg7: memref<4x2xf32, #tpu.memory_space<vmem>>, %arg8: memref<1x2xf32, #tpu.memory_space<vmem>>, %arg9: memref<2x128xf32, #tpu.memory_space<vmem>>, %arg10: memref<1x128xf32, #tpu.memory_space<vmem>>, %arg11: memref<2x128xf32, #tpu.memory_space<vmem>>, %arg12: memref<2x4xf32, #tpu.memory_space<vmem>>) attributes {dimension_semantics = [#tpu.dimension_semantics<parallel>, #tpu.dimension_semantics<arbitrary>], iteration_bounds = array<i64: 1, 2>, scalar_prefetch = 0 : i64, scratch_operands = 1 : i64, tpu.core_type = #tpu.core_type<tc>, window_params = [{transform_indices = @transform_0, window_bounds = array<i64: 2, 4, 128>}, {pipeline_mode = #tpu.pipeline_mode<synchronous>, transform_indices = @transform_1, window_bounds = array<i64: 4, 8>}, {pipeline_mode = #tpu.pipeline_mode<synchronous>, transform_indices = @transform_2, window_bounds = array<i64: 1, 8>}, {pipeline_mode = #tpu.pipeline_mode<synchronous>, transform_indices = @transform_3, window_bounds = array<i64: 8, 4>}, {pipeline_mode = #tpu.pipeline_mode<synchronous>, transform_indices = @transform_4, window_bounds = array<i64: 1, 4>}, {pipeline_mode = #tpu.pipeline_mode<synchronous>, transform_indices = @transform_5, window_bounds = array<i64: 4, 2>}, {pipeline_mode = #tpu.pipeline_mode<synchronous>, transform_indices = @transform_6, window_bounds = array<i64: 1, 2>}, {pipeline_mode = #tpu.pipeline_mode<synchronous>, transform_indices = @transform_7, window_bounds = array<i64: 2, 128>}, {pipeline_mode = #tpu.pipeline_mode<synchronous>, transform_indices = @transform_8, window_bounds = array<i64: 1, 128>}, {transform_indices = @transform_9, window_bounds = array<i64: 2, 128>}]} {
    %c0_i32 = arith.constant 0 : i32
    %0 = arith.cmpi eq, %arg1, %c0_i32 : i32
    %1 = arith.extui %0 : i1 to i32
    %c0_i32_0 = arith.constant 0 : i32
    %2 = arith.cmpi ne, %1, %c0_i32_0 : i32
    scf.if %2 {
      %cst_8 = arith.constant 0.000000e+00 : f32
      %11 = vector.broadcast %cst_8 : f32 to vector<2x4xf32>
      %c0_9 = arith.constant 0 : index
      %c0_10 = arith.constant 0 : index
      %12 = vector.load %arg12[%c0_9, %c0_10] : memref<2x4xf32, #tpu.memory_space<vmem>>, vector<2x4xf32>
      tpu.vector_store %arg12[%c0_9, %c0_10], %11 {strides = array<i32>} : memref<2x4xf32, #tpu.memory_space<vmem>>, vector<2x4xf32>,
    } else {
    }
    %c0 = arith.constant 0 : index
    %c0_1 = arith.constant 0 : index
    %3 = vector.load %arg12[%c0, %c0_1] : memref<2x4xf32, #tpu.memory_space<vmem>>, vector<2x4xf32>
    %c0_2 = arith.constant 0 : index
    %c0_3 = arith.constant 0 : index
    %c0_4 = arith.constant 0 : index
    %4 = vector.load %arg2[%c0_2, %c0_3, %c0_4] : memref<2x4x128xf32, #tpu.memory_space<vmem>>, vector<2x4x128xf32>
    %cst = arith.constant dense<0.000000e+00> : vector<2x4xf32>
    %5 = vector.multi_reduction <add>, %4, %cst [2] : vector<2x4x128xf32> to vector<2x4xf32>
    %6 = arith.addf %3, %5 : vector<2x4xf32>
    %c0_5 = arith.constant 0 : index
    %c0_6 = arith.constant 0 : index
    %7 = vector.load %arg12[%c0_5, %c0_6] : memref<2x4xf32, #tpu.memory_space<vmem>>, vector<2x4xf32>
    tpu.vector_store %arg12[%c0_5, %c0_6], %6 {strides = array<i32>} : memref<2x4xf32, #tpu.memory_space<vmem>>, vector<2x4xf32>,
    %c1_i32 = arith.constant 1 : i32
    %8 = arith.cmpi eq, %arg1, %c1_i32 : i32
    %9 = arith.extui %8 : i1 to i32
    %c0_i32_7 = arith.constant 0 : i32
    %10 = arith.cmpi ne, %9, %c0_i32_7 : i32
    scf.if %10 {
      %c0_8 = arith.constant 0 : index
      %c0_9 = arith.constant 0 : index
      %11 = vector.load %arg12[%c0_8, %c0_9] : memref<2x4xf32, #tpu.memory_space<vmem>>, vector<2x4xf32>
      %cst_10 = arith.constant 3.906250e-03 : f32
      %12 = vector.broadcast %cst_10 : f32 to vector<2x4xf32>
      %13 = arith.mulf %11, %12 : vector<2x4xf32>
      %c0_11 = arith.constant 0 : index
      %c0_12 = arith.constant 0 : index
      %14 = vector.load %arg3[%c0_11, %c0_12] : memref<4x8xf32, #tpu.memory_space<vmem>>, vector<4x8xf32>
      %cst_13 = arith.constant dense<0.000000e+00> : vector<2x8xf32>
      %15 = tpu.matmul %13, %14, %cst_13 {dimension_numbers = #tpu.dot_dimension_numbers<[1], [0], [0], [1], [0, 0, 1, 1], [], []>} : vector<2x4xf32>, vector<4x8xf32>, vector<2x8xf32> -> vector<2x8xf32>
      %c0_14 = arith.constant 0 : index
      %c0_15 = arith.constant 0 : index
      %16 = vector.load %arg4[%c0_14, %c0_15] : memref<1x8xf32, #tpu.memory_space<vmem>>, vector<1x8xf32>
      %17 = vector.broadcast %16 : vector<1x8xf32> to vector<2x8xf32>
      %18 = arith.addf %15, %17 : vector<2x8xf32>
      %cst_16 = arith.constant 0.000000e+00 : f32
      %cst_17 = arith.constant 6.000000e+00 : f32
      %19 = vector.broadcast %cst_16 : f32 to vector<2x8xf32>
      %20 = arith.maximumf %19, %18 : vector<2x8xf32>
      %21 = vector.broadcast %cst_17 : f32 to vector<2x8xf32>
      %22 = arith.minimumf %21, %20 : vector<2x8xf32>
      %c0_18 = arith.constant 0 : index
      %c0_19 = arith.constant 0 : index
      %23 = vector.load %arg5[%c0_18, %c0_19] : memref<8x4xf32, #tpu.memory_space<vmem>>, vector<8x4xf32>
      %cst_20 = arith.constant dense<0.000000e+00> : vector<2x4xf32>
      %24 = tpu.matmul %22, %23, %cst_20 {dimension_numbers = #tpu.dot_dimension_numbers<[1], [0], [0], [1], [0, 0, 1, 1], [], []>} : vector<2x8xf32>, vector<8x4xf32>, vector<2x4xf32> -> vector<2x4xf32>
      %c0_21 = arith.constant 0 : index
      %c0_22 = arith.constant 0 : index
      %25 = vector.load %arg6[%c0_21, %c0_22] : memref<1x4xf32, #tpu.memory_space<vmem>>, vector<1x4xf32>
      %26 = vector.broadcast %25 : vector<1x4xf32> to vector<2x4xf32>
      %27 = arith.addf %24, %26 : vector<2x4xf32>
      %cst_23 = arith.constant 0.000000e+00 : f32
      %cst_24 = arith.constant 6.000000e+00 : f32
      %28 = vector.broadcast %cst_23 : f32 to vector<2x4xf32>
      %29 = arith.maximumf %28, %27 : vector<2x4xf32>
      %30 = vector.broadcast %cst_24 : f32 to vector<2x4xf32>
      %31 = arith.minimumf %30, %29 : vector<2x4xf32>
      %c0_25 = arith.constant 0 : index
      %c0_26 = arith.constant 0 : index
      %32 = vector.load %arg7[%c0_25, %c0_26] : memref<4x2xf32, #tpu.memory_space<vmem>>, vector<4x2xf32>
      %cst_27 = arith.constant dense<0.000000e+00> : vector<2x2xf32>
      %33 = tpu.matmul %31, %32, %cst_27 {dimension_numbers = #tpu.dot_dimension_numbers<[1], [0], [0], [1], [0, 0, 1, 1], [], []>} : vector<2x4xf32>, vector<4x2xf32>, vector<2x2xf32> -> vector<2x2xf32>
      %c0_28 = arith.constant 0 : index
      %c0_29 = arith.constant 0 : index
      %34 = vector.load %arg8[%c0_28, %c0_29] : memref<1x2xf32, #tpu.memory_space<vmem>>, vector<1x2xf32>
      %35 = vector.broadcast %34 : vector<1x2xf32> to vector<2x2xf32>
      %36 = arith.addf %33, %35 : vector<2x2xf32>
      %cst_30 = arith.constant 0.000000e+00 : f32
      %cst_31 = arith.constant 6.000000e+00 : f32
      %37 = vector.broadcast %cst_30 : f32 to vector<2x2xf32>
      %38 = arith.maximumf %37, %36 : vector<2x2xf32>
      %39 = vector.broadcast %cst_31 : f32 to vector<2x2xf32>
      %40 = arith.minimumf %39, %38 : vector<2x2xf32>
      %c0_32 = arith.constant 0 : index
      %c0_33 = arith.constant 0 : index
      %41 = vector.load %arg9[%c0_32, %c0_33] : memref<2x128xf32, #tpu.memory_space<vmem>>, vector<2x128xf32>
      %cst_34 = arith.constant dense<0.000000e+00> : vector<2x128xf32>
      %42 = tpu.matmul %40, %41, %cst_34 {dimension_numbers = #tpu.dot_dimension_numbers<[1], [0], [0], [1], [0, 0, 1, 1], [], []>} : vector<2x2xf32>, vector<2x128xf32>, vector<2x128xf32> -> vector<2x128xf32>
      %c0_35 = arith.constant 0 : index
      %c0_36 = arith.constant 0 : index
      %43 = vector.load %arg10[%c0_35, %c0_36] : memref<1x128xf32, #tpu.memory_space<vmem>>, vector<1x128xf32>
      %44 = vector.broadcast %43 : vector<1x128xf32> to vector<2x128xf32>
      %45 = arith.addf %42, %44 : vector<2x128xf32>
      %46 = arith.negf %45 : vector<2x128xf32>
      %47 = math.exp %46 : vector<2x128xf32>
      %cst_37 = arith.constant 1.000000e+00 : f32
      %48 = vector.broadcast %cst_37 : f32 to vector<2x128xf32>
      %49 = arith.addf %48, %47 : vector<2x128xf32>
      %50 = arith.divf %48, %49 : vector<2x128xf32>
      %c0_38 = arith.constant 0 : index
      %c0_39 = arith.constant 0 : index
      %51 = vector.load %arg11[%c0_38, %c0_39] : memref<2x128xf32, #tpu.memory_space<vmem>>, vector<2x128xf32>
      tpu.vector_store %arg11[%c0_38, %c0_39], %50 {strides = array<i32>} : memref<2x128xf32, #tpu.memory_space<vmem>>, vector<2x128xf32>,
    } else {
    }
    return
  }
  func.func @transform_0(%arg0: i32, %arg1: i32) -> (i32, i32, i32) {
    %c0_i32 = arith.constant 0 : i32
    %c0_i32_0 = arith.constant 0 : i32
    return %arg0, %c0_i32, %arg1 : i32, i32, i32
  }
  func.func @transform_1(%arg0: i32, %arg1: i32) -> (i32, i32) {
    %c0_i32 = arith.constant 0 : i32
    %c0_i32_0 = arith.constant 0 : i32
    %c0_i32_1 = arith.constant 0 : i32
    return %c0_i32, %c0_i32_0 : i32, i32
  }
  func.func @transform_2(%arg0: i32, %arg1: i32) -> (i32, i32) {
    %c0_i32 = arith.constant 0 : i32
    %c0_i32_0 = arith.constant 0 : i32
    %c0_i32_1 = arith.constant 0 : i32
    return %c0_i32, %c0_i32_0 : i32, i32
  }
  func.func @transform_3(%arg0: i32, %arg1: i32) -> (i32, i32) {
    %c0_i32 = arith.constant 0 : i32
    %c0_i32_0 = arith.constant 0 : i32
    %c0_i32_1 = arith.constant 0 : i32
    return %c0_i32, %c0_i32_0 : i32, i32
  }
  func.func @transform_4(%arg0: i32, %arg1: i32) -> (i32, i32) {
    %c0_i32 = arith.constant 0 : i32
    %c0_i32_0 = arith.constant 0 : i32
    %c0_i32_1 = arith.constant 0 : i32
    return %c0_i32, %c0_i32_0 : i32, i32
  }
  func.func @transform_5(%arg0: i32, %arg1: i32) -> (i32, i32) {
    %c0_i32 = arith.constant 0 : i32
    %c0_i32_0 = arith.constant 0 : i32
    %c0_i32_1 = arith.constant 0 : i32
    return %c0_i32, %c0_i32_0 : i32, i32
  }
  func.func @transform_6(%arg0: i32, %arg1: i32) -> (i32, i32) {
    %c0_i32 = arith.constant 0 : i32
    %c0_i32_0 = arith.constant 0 : i32
    %c0_i32_1 = arith.constant 0 : i32
    return %c0_i32, %c0_i32_0 : i32, i32
  }
  func.func @transform_7(%arg0: i32, %arg1: i32) -> (i32, i32) {
    %c0_i32 = arith.constant 0 : i32
    %c0_i32_0 = arith.constant 0 : i32
    %c0_i32_1 = arith.constant 0 : i32
    return %c0_i32, %c0_i32_0 : i32, i32
  }
  func.func @transform_8(%arg0: i32, %arg1: i32) -> (i32, i32) {
    %c0_i32 = arith.constant 0 : i32
    %c0_i32_0 = arith.constant 0 : i32
    %c0_i32_1 = arith.constant 0 : i32
    return %c0_i32, %c0_i32_0 : i32, i32
  }
  func.func @transform_9(%arg0: i32, %arg1: i32) -> (i32, i32) {
    %c0_i32 = arith.constant 0 : i32
    %c0_i32_0 = arith.constant 0 : i32
    return %arg0, %c0_i32 : i32, i32
  }
}

module attributes {stable_mosaic.version = 11 : i64} {
  func.func @_head_kernel(%arg0: i32, %arg1: i32, %arg2: memref<2x4x128xf32, #tpu.memory_space<vmem>>, %arg3: memref<4x8xf32, #tpu.memory_space<vmem>>, %arg4: memref<1x8xf32, #tpu.memory_space<vmem>>, %arg5: memref<8x4xf32, #tpu.memory_space<vmem>>, %arg6: memref<1x4xf32, #tpu.memory_space<vmem>>, %arg7: memref<4x2xf32, #tpu.memory_space<vmem>>, %arg8: memref<1x2xf32, #tpu.memory_space<vmem>>, %arg9: memref<2x128xf32, #tpu.memory_space<vmem>>, %arg10: memref<1x128xf32, #tpu.memory_space<vmem>>, %arg11: memref<2x128xf32, #tpu.memory_space<vmem>>, %arg12: memref<2x4xf32, #tpu.memory_space<vmem>>) attributes {dimension_semantics = [#tpu.dimension_semantics<parallel>, #tpu.dimension_semantics<arbitrary>], iteration_bounds = array<i64: 1, 2>, scalar_prefetch = 0 : i64, scratch_operands = 1 : i64, tpu.core_type = #tpu.core_type<tc>, window_params = [{transform_indices = @transform_0, window_bounds = array<i64: 2, 4, 128>}, {pipeline_mode = #tpu.pipeline_mode<synchronous>, transform_indices = @transform_1, window_bounds = array<i64: 4, 8>}, {pipeline_mode = #tpu.pipeline_mode<synchronous>, transform_indices = @transform_2, window_bounds = array<i64: 1, 8>}, {pipeline_mode = #tpu.pipeline_mode<synchronous>, transform_indices = @transform_3, window_bounds = array<i64: 8, 4>}, {pipeline_mode = #tpu.pipeline_mode<synchronous>, transform_indices = @transform_4, window_bounds = array<i64: 1, 4>}, {pipeline_mode = #tpu.pipeline_mode<synchronous>, transform_indices = @transform_5, window_bounds = array<i64: 4, 2>}, {pipeline_mode = #tpu.pipeline_mode<synchronous>, transform_indices = @transform_6, window_bounds = array<i64: 1, 2>}, {pipeline_mode = #tpu.pipeline_mode<synchronous>, transform_indices = @transform_7, window_bounds = array<i64: 2, 128>}, {pipeline_mode = #tpu.pipeline_mode<synchronous>, transform_indices = @transform_8, window_bounds = array<i64: 1, 128>}, {transform_indices = @transform_9, window_bounds = array<i64: 2, 128>}]} {
    %c0_i32 = arith.constant 0 : i32
    %0 = arith.cmpi eq, %arg1, %c0_i32 : i32
    %1 = arith.extui %0 : i1 to i32
    %c0_i32_0 = arith.constant 0 : i32
    %2 = arith.cmpi ne, %1, %c0_i32_0 : i32
    scf.if %2 {
      %cst_8 = arith.constant 0.000000e+00 : f32
      %11 = vector.broadcast %cst_8 : f32 to vector<2x4xf32>
      %c0_9 = arith.constant 0 : index
      %c0_10 = arith.constant 0 : index
      %12 = vector.load %arg12[%c0_9, %c0_10] : memref<2x4xf32, #tpu.memory_space<vmem>>, vector<2x4xf32>
      tpu.vector_store %arg12[%c0_9, %c0_10], %11 {strides = array<i32>} : memref<2x4xf32, #tpu.memory_space<vmem>>, vector<2x4xf32>,
    } else {
    }
    %c0 = arith.constant 0 : index
    %c0_1 = arith.constant 0 : index
    %3 = vector.load %arg12[%c0, %c0_1] : memref<2x4xf32, #tpu.memory_space<vmem>>, vector<2x4xf32>
    %c0_2 = arith.constant 0 : index
    %c0_3 = arith.constant 0 : index
    %c0_4 = arith.constant 0 : index
    %4 = vector.load %arg2[%c0_2, %c0_3, %c0_4] : memref<2x4x128xf32, #tpu.memory_space<vmem>>, vector<2x4x128xf32>
    %cst = arith.constant dense<0.000000e+00> : vector<2x4xf32>
    %5 = vector.multi_reduction <add>, %4, %cst [2] : vector<2x4x128xf32> to vector<2x4xf32>
    %6 = arith.addf %3, %5 : vector<2x4xf32>
    %c0_5 = arith.constant 0 : index
    %c0_6 = arith.constant 0 : index
    %7 = vector.load %arg12[%c0_5, %c0_6] : memref<2x4xf32, #tpu.memory_space<vmem>>, vector<2x4xf32>
    tpu.vector_store %arg12[%c0_5, %c0_6], %6 {strides = array<i32>} : memref<2x4xf32, #tpu.memory_space<vmem>>, vector<2x4xf32>,
    %c1_i32 = arith.constant 1 : i32
    %8 = arith.cmpi eq, %arg1, %c1_i32 : i32
    %9 = arith.extui %8 : i1 to i32
    %c0_i32_7 = arith.constant 0 : i32
    %10 = arith.cmpi ne, %9, %c0_i32_7 : i32
    scf.if %10 {
      %c0_8 = arith.constant 0 : index
      %c0_9 = arith.constant 0 : index
      %11 = vector.load %arg12[%c0_8, %c0_9] : memref<2x4xf32, #tpu.memory_space<vmem>>, vector<2x4xf32>
      %cst_10 = arith.constant 3.906250e-03 : f32
      %12 = vector.broadcast %cst_10 : f32 to vector<2x4xf32>
      %13 = arith.mulf %11, %12 : vector<2x4xf32>
      %c0_11 = arith.constant 0 : index
      %c0_12 = arith.constant 0 : index
      %14 = vector.load %arg3[%c0_11, %c0_12] : memref<4x8xf32, #tpu.memory_space<vmem>>, vector<4x8xf32>
      %cst_13 = arith.constant dense<0.000000e+00> : vector<2x8xf32>
      %15 = tpu.matmul %13, %14, %cst_13 {dimension_numbers = #tpu.dot_dimension_numbers<[1], [0], [0], [1], [0, 0, 1, 1], [], []>} : vector<2x4xf32>, vector<4x8xf32>, vector<2x8xf32> -> vector<2x8xf32>
      %c0_14 = arith.constant 0 : index
      %c0_15 = arith.constant 0 : index
      %16 = vector.load %arg4[%c0_14, %c0_15] : memref<1x8xf32, #tpu.memory_space<vmem>>, vector<1x8xf32>
      %17 = vector.broadcast %16 : vector<1x8xf32> to vector<2x8xf32>
      %18 = arith.addf %15, %17 : vector<2x8xf32>
      %cst_16 = arith.constant 0.000000e+00 : f32
      %cst_17 = arith.constant 6.000000e+00 : f32
      %19 = vector.broadcast %cst_16 : f32 to vector<2x8xf32>
      %20 = arith.maximumf %19, %18 : vector<2x8xf32>
      %21 = vector.broadcast %cst_17 : f32 to vector<2x8xf32>
      %22 = arith.minimumf %21, %20 : vector<2x8xf32>
      %c0_18 = arith.constant 0 : index
      %c0_19 = arith.constant 0 : index
      %23 = vector.load %arg5[%c0_18, %c0_19] : memref<8x4xf32, #tpu.memory_space<vmem>>, vector<8x4xf32>
      %cst_20 = arith.constant dense<0.000000e+00> : vector<2x4xf32>
      %24 = tpu.matmul %22, %23, %cst_20 {dimension_numbers = #tpu.dot_dimension_numbers<[1], [0], [0], [1], [0, 0, 1, 1], [], []>} : vector<2x8xf32>, vector<8x4xf32>, vector<2x4xf32> -> vector<2x4xf32>
      %c0_21 = arith.constant 0 : index
      %c0_22 = arith.constant 0 : index
      %25 = vector.load %arg6[%c0_21, %c0_22] : memref<1x4xf32, #tpu.memory_space<vmem>>, vector<1x4xf32>
      %26 = vector.broadcast %25 : vector<1x4xf32> to vector<2x4xf32>
      %27 = arith.addf %24, %26 : vector<2x4xf32>
      %cst_23 = arith.constant 0.000000e+00 : f32
      %cst_24 = arith.constant 6.000000e+00 : f32
      %28 = vector.broadcast %cst_23 : f32 to vector<2x4xf32>
      %29 = arith.maximumf %28, %27 : vector<2x4xf32>
      %30 = vector.broadcast %cst_24 : f32 to vector<2x4xf32>
      %31 = arith.minimumf %30, %29 : vector<2x4xf32>
      %c0_25 = arith.constant 0 : index
      %c0_26 = arith.constant 0 : index
      %32 = vector.load %arg7[%c0_25, %c0_26] : memref<4x2xf32, #tpu.memory_space<vmem>>, vector<4x2xf32>
      %cst_27 = arith.constant dense<0.000000e+00> : vector<2x2xf32>
      %33 = tpu.matmul %31, %32, %cst_27 {dimension_numbers = #tpu.dot_dimension_numbers<[1], [0], [0], [1], [0, 0, 1, 1], [], []>} : vector<2x4xf32>, vector<4x2xf32>, vector<2x2xf32> -> vector<2x2xf32>
      %c0_28 = arith.constant 0 : index
      %c0_29 = arith.constant 0 : index
      %34 = vector.load %arg8[%c0_28, %c0_29] : memref<1x2xf32, #tpu.memory_space<vmem>>, vector<1x2xf32>
      %35 = vector.broadcast %34 : vector<1x2xf32> to vector<2x2xf32>
      %36 = arith.addf %33, %35 : vector<2x2xf32>
      %cst_30 = arith.constant 0.000000e+00 : f32
      %cst_31 = arith.constant 6.000000e+00 : f32
      %37 = vector.broadcast %cst_30 : f32 to vector<2x2xf32>
      %38 = arith.maximumf %37, %36 : vector<2x2xf32>
      %39 = vector.broadcast %cst_31 : f32 to vector<2x2xf32>
      %40 = arith.minimumf %39, %38 : vector<2x2xf32>
      %c0_32 = arith.constant 0 : index
      %c0_33 = arith.constant 0 : index
      %41 = vector.load %arg9[%c0_32, %c0_33] : memref<2x128xf32, #tpu.memory_space<vmem>>, vector<2x128xf32>
      %cst_34 = arith.constant dense<0.000000e+00> : vector<2x128xf32>
      %42 = tpu.matmul %40, %41, %cst_34 {dimension_numbers = #tpu.dot_dimension_numbers<[1], [0], [0], [1], [0, 0, 1, 1], [], []>} : vector<2x2xf32>, vector<2x128xf32>, vector<2x128xf32> -> vector<2x128xf32>
      %c0_35 = arith.constant 0 : index
      %c0_36 = arith.constant 0 : index
      %43 = vector.load %arg10[%c0_35, %c0_36] : memref<1x128xf32, #tpu.memory_space<vmem>>, vector<1x128xf32>
      %44 = vector.broadcast %43 : vector<1x128xf32> to vector<2x128xf32>
      %45 = arith.addf %42, %44 : vector<2x128xf32>
      %46 = arith.negf %45 : vector<2x128xf32>
      %47 = math.exp %46 : vector<2x128xf32>
      %cst_37 = arith.constant 1.000000e+00 : f32
      %48 = vector.broadcast %cst_37 : f32 to vector<2x128xf32>
      %49 = arith.addf %48, %47 : vector<2x128xf32>
      %50 = arith.divf %48, %49 : vector<2x128xf32>
      %c0_38 = arith.constant 0 : index
      %c0_39 = arith.constant 0 : index
      %51 = vector.load %arg11[%c0_38, %c0_39] : memref<2x128xf32, #tpu.memory_space<vmem>>, vector<2x128xf32>
      tpu.vector_store %arg11[%c0_38, %c0_39], %50 {strides = array<i32>} : memref<2x128xf32, #tpu.memory_space<vmem>>, vector<2x128xf32>,
    } else {
    }
    return
  }
  func.func @transform_0(%arg0: i32, %arg1: i32) -> (i32, i32, i32) {
    %c0_i32 = arith.constant 0 : i32
    %c0_i32_0 = arith.constant 0 : i32
    return %arg0, %c0_i32, %arg1 : i32, i32, i32
  }
  func.func @transform_1(%arg0: i32, %arg1: i32) -> (i32, i32) {
    %c0_i32 = arith.constant 0 : i32
    %c0_i32_0 = arith.constant 0 : i32
    %c0_i32_1 = arith.constant 0 : i32
    return %c0_i32, %c0_i32_0 : i32, i32
  }
  func.func @transform_2(%arg0: i32, %arg1: i32) -> (i32, i32) {
    %c0_i32 = arith.constant 0 : i32
    %c0_i32_0 = arith.constant 0 : i32
    %c0_i32_1 = arith.constant 0 : i32
    return %c0_i32, %c0_i32_0 : i32, i32
  }
  func.func @transform_3(%arg0: i32, %arg1: i32) -> (i32, i32) {
    %c0_i32 = arith.constant 0 : i32
    %c0_i32_0 = arith.constant 0 : i32
    %c0_i32_1 = arith.constant 0 : i32
    return %c0_i32, %c0_i32_0 : i32, i32
  }
  func.func @transform_4(%arg0: i32, %arg1: i32) -> (i32, i32) {
    %c0_i32 = arith.constant 0 : i32
    %c0_i32_0 = arith.constant 0 : i32
    %c0_i32_1 = arith.constant 0 : i32
    return %c0_i32, %c0_i32_0 : i32, i32
  }
  func.func @transform_5(%arg0: i32, %arg1: i32) -> (i32, i32) {
    %c0_i32 = arith.constant 0 : i32
    %c0_i32_0 = arith.constant 0 : i32
    %c0_i32_1 = arith.constant 0 : i32
    return %c0_i32, %c0_i32_0 : i32, i32
  }
  func.func @transform_6(%arg0: i32, %arg1: i32) -> (i32, i32) {
    %c0_i32 = arith.constant 0 : i32
    %c0_i32_0 = arith.constant 0 : i32
    %c0_i32_1 = arith.constant 0 : i32
    return %c0_i32, %c0_i32_0 : i32, i32
  }
  func.func @transform_7(%arg0: i32, %arg1: i32) -> (i32, i32) {
    %c0_i32 = arith.constant 0 : i32
    %c0_i32_0 = arith.constant 0 : i32
    %c0_i32_1 = arith.constant 0 : i32
    return %c0_i32, %c0_i32_0 : i32, i32
  }
  func.func @transform_8(%arg0: i32, %arg1: i32) -> (i32, i32) {
    %c0_i32 = arith.constant 0 : i32
    %c0_i32_0 = arith.constant 0 : i32
    %c0_i32_1 = arith.constant 0 : i32
    return %c0_i32, %c0_i32_0 : i32, i32
  }
  func.func @transform_9(%arg0: i32, %arg1: i32) -> (i32, i32) {
    %c0_i32 = arith.constant 0 : i32
    %c0_i32_0 = arith.constant 0 : i32
    return %arg0, %c0_i32 : i32, i32
  }
}

</mosaic_0001>

<bundles_post_ra>
// kernel: tpu_custom_call.1
= control target key start
LH: loop header
LB: loop body
LE: loop exit
PB: predicated region body
PF: predicated region fallthrough
CT: control target
= control target key end

     0   :  { %14 = vsyncpa [#allocation5], 0  ;;  %s1371_s0 = inlined_call_operand.vmem [shape: f32[2,4,256], index: 0, kind: input, shape index: {}]   ;;  %s1372_s1 = inlined_call_operand.hbm [shape: f32[4,8], index: 1, kind: input, shape index: {}]   ;;  %s1373_s2 = inlined_call_operand.vmem [shape: f32[1,8], index: 2, kind: input, shape index: {}]   ;;  %s1374_s3 = inlined_call_operand.vmem [shape: f32[8,4], index: 3, kind: input, shape index: {}]   ;;  %s1375_s4 = inlined_call_operand.hbm [shape: f32[1,4], index: 4, kind: input, shape index: {}]   ;;  %s1376_s5 = inlined_call_operand.vmem [shape: f32[4,2], index: 5, kind: input, shape index: {}]   ;;  %s1377_s6 = inlined_call_operand.vmem [shape: f32[1,2], index: 6, kind: input, shape index: {}]   ;;  %s1378_s7 = inlined_call_operand.vmem [shape: f32[2,128], index: 7, kind: input, shape index: {}]   ;;  %s1379_s8 = inlined_call_operand.vmem [shape: f32[1,128], index: 8, kind: input, shape index: {}]   ;;  %s1380_s9 = inlined_call_operand.hbm [shape: f32[2,128], index: 9, kind: output, shape index: {}]  }
   0x1   :  { %15 = vsyncpa [#allocation8], 0 }
   0x2   :  { %16 = vsyncpa [#allocation6], 0  ;;  %s1210_s30 = smov 0   ;;  %s1212_s10 = smov 0  }
   0x3   :  { %s1214_s11 = smov 0   ;;  %s1216_s12 = smov 0  }
   0x4   :  { %s1218_s13 = smov 0  }
   0x5 LB: > { %s894_s14 = sadd.s32 4294967295, %s1152_s13   ;;  %s31_s15 = sadd.s32 1, %s1148_s12  ;;  %s1152_s13 = sphi %s1218_s13, %s22_s13   ;;  %s1148_s12 = sphi %s1216_s12, %s1394_s12   ;;  %s1144_s11 = sphi %s1214_s11, %s1393_s11   ;;  %s1140_s10 = sphi %s1212_s10, %s1392_s10   ;;  %s1136_s30 = sphi %s1210_s30, %s1391_s30  }
   0x6   : > { %p32_p0 = scmp.ge.s32.totalorder %s31_s15, 2  ;;  %s43_s16 = sadd.s32 1, %s1140_s10 }
   0x7   : > { %p50_p1 = scmp.ne.s32.totalorder %s1140_s10, %s1136_s30  ;;  %p51_p2 = scmp.eq.s32.totalorder %s1152_s13, 0 }
   0x8   : > { %s1396_s15 = smov (%p32_p0, %s31_s15), 0  ;;  %p895_p4 = scmp.ge.s32.totalorder %s1152_s13, 1 }
   0x9   : > { %p1243_p3 = por %p51_p2, %p50_p1  ;;  %s39_s18 = ssub.s32 %s1148_s12, %s1396_s15 }
   0xa   : > { %p261_p5 = scmp.lt.s32.totalorder %s1152_s13, 3  ;;  %p41_p6 = scmp.eq.s32.totalorder %s39_s18, 0 }
   0xb   : > { %p1257_p8 = scmp.eq.s32.totalorder %s894_s14, 0  ;;  %s1154_s22 = smov [#allocation4]  }
   0xc   : > { %p1251_p7 = pnand %p895_p4, %p261_p5  ;;  %s274_s23 = sshll.u32 %s1154_s22, 4  ;;  %s275_s23 = int_to_ptr.vmem [resolvable:$true] %s274_s23 }
   0xd   : > { %s1386_s20 = scalar_select %p1257_p8, 1, 0 }
   0xe   : > { %s1385_s19 = scalar_select %p1251_p7, 1, 0 }
   0xf   : > { %s1262_s21 = scalar_select %p41_p6, %s1140_s10, %s43_s16  }
  0x10   : > { %p963_p9 = pneg %p1251_p7  ;;  %s1155_s25 = smov [#allocation7]  }
  0x11   : > { %s291_s26 = sshll.u32 %s1155_s25, 4  ;;  %s1037_s27 = scalar_lea.vmem %s275_s23, 64  ;;  %s292_s26 = int_to_ptr.vmem [resolvable:$true] %s291_s26 }
  0x12   : > { %p1268_p10 = pnand %p1257_p8, %p963_p9  ;;  %p1038_p12 = scmp.ne.s32.totalorder %s275_s23, %s1037_s27 }
  0x13   : > { %p1045_p1 = scmp.lt.s32.totalorder %s275_s23, %s275_s23  ;;  %p1046_p2 = scmp.lt.s32.totalorder %s1037_s27, %s1037_s27 }
  0x14   : > { %p1028_p11 = pneg %p1268_p10 }
  0x15   : > { %p1047_p4 = por %p1046_p2, %p1045_p1 }
  0x16   : > { %p1040_p13 = pnand %p1038_p12, %p1028_p11 }
  0x18   : > { %p1041_p0 = pneg %p1040_p13 }
  0x1a   : > { %p1048_p5 = pnand %p1047_p4, %p1041_p0 }
  0x1c   : > { %1051 = shalt.err (!%p1048_p5)
}
  0x1d   : > { %966 = dma.hbm_to_vmem [thread:$0]  (!%p1268_p10), %s1372_s1, 64, %s275_s23, [#allocation5]  }
  0x1e   : > { %s1063_s16 = scalar_lea.vmem %s292_s26, 16  ;;  %s1070_s18 = scalar_lea.vmem %s292_s26, 32 }
  0x1f   : > { %p1064_p6 = scmp.ne.s32.totalorder %s292_s26, %s1063_s16  ;;  %p1071_p12 = scmp.lt.s32.totalorder %s292_s26, %s292_s26 }
  0x20   : > { %p1072_p13 = scmp.lt.s32.totalorder %s1070_s18, %s1063_s16 }
  0x21   : > { %p1066_p9 = pnand %p1064_p6, %p1028_p11 }
  0x22   : > { %p1073_p7 = por %p1072_p13, %p1071_p12 }
  0x23   : > { %p1067_p8 = pneg %p1066_p9 }
  0x25   : > { %p1074_p1 = pnand %p1073_p7, %p1067_p8 }
  0x27   : > { %1077 = shalt.err (!%p1074_p1)
}
  0x28   : > { %969 = dma.hbm_to_vmem [thread:$0]  (!%p1268_p10), %s1375_s4, 16, %s292_s26, [#allocation8]  }
  0x29   : > { %p898_p0 = scmp.ge.s32.totalorder %s1152_s13, 2 }
  0x2b   : > { %310 = sbr.rel (%p898_p0) target bundleno = 53 (0x35), region = 48 }
  0x30   : > { %313 = sbr.rel (!%p1243_p3) target bundleno = 53 (0x35), region = 52  ;;  %s315_s23 = sand.u32 (%p1243_p3), 1, %s1140_s10  }
  0x31   : > { %s900_s27 = sshll.u32 (%p1243_p3), %s1148_s12, 2  ;;  %s899_s28 = sshll.u32 (%p1243_p3), %s315_s23, 3 }
  0x32   : > { %s322_s18 = scalar_lea.vmem (%p1243_p3), %s1371_s0, %s900_s27  ;;  %s317_s24 = scalar_lea.vmem (%p1243_p3), [#allocation3], %s899_s28 }
  0x33   : > { %v339_v0 = vld [vmem:[%s322_s18] sm:$0xf] (%p1243_p3)  ;;  %v341_v1 = vld [vmem:[%s322_s18 + $0x8] sm:$0xf] (%p1243_p3) }
  0x34   : > { %340 = vst [vmem:[%s317_s24] sm:$0xf] (%p1243_p3), %v339_v0  ;;  %342 = vst [vmem:[%s317_s24 + $0x4] sm:$0xf] (%p1243_p3), %v341_v1 }
  0x35 PF: > { %p1388_p7 = scmp.ne.s32.totalorder %s1385_s19, 0 }
  0x36   : > { %s376_s17 = sand.u32 (!%p1388_p7), 1, %s1136_s30   ;;  %p1389_p3 = scmp.ne.s32.totalorder (!%p1388_p7), %s1386_s20, 0 }
  0x37   : > { %373 = sbr.rel (%p1388_p7) target bundleno = 1071 (0x42f), region = 93  ;;  %s902_s26 = sshll.u32 (!%p1388_p7), %s376_s17, 3 }
  0x38   : > { %s378_s22 = scalar_lea.vmem (!%p1388_p7), [#allocation3], %s902_s26 }
  0x3c   : > { %1123 = dma.done.wait (%p1389_p3), [#allocation5], 64  }
  0x3d   : > { %1125 = vsyncadd (%p1389_p3), [#allocation5], 4294967232 }
  0x3e   : > { %1127 = dma.done.wait (%p1389_p3), [#allocation8], 16  }
  0x3f   : > { %1129 = vsyncadd (%p1389_p3), [#allocation8], 4294967280  ;;  %p905_p8 = scmp.ne.s32.totalorder %s1144_s11, 0 }
  0x41   : > { %418 = sbr.rel (%p905_p8) target bundleno = 72 (0x48), region = 109 }
  0x46   : > { %vm419_vm0 = vcmask 25600   ;;  %v1156_v2 = vmov 0.0  }
  0x47   : > { %420 = vst.msk [vmem:[#allocation2] sm:$0x3] %vm419_vm0, %v1156_v2 }
  0x48 PF: > { %v422_v3 = vld [vmem:[%s378_s22] sm:$0xf]  ;;  %vm424_vm1 = vcmask 1043456   ;;  %v423_v4 = vld [vmem:[%s378_s22 + $0x4] sm:$0xf]  ;;  %v433_v7 = vlaneseq  ;;  %vm443_vm2 = vcmask 1041409  }
  0x49   : > { %v425_v5 = vsel %vm424_vm1, %v422_v3, 0.0  ;;  %v428_v6 = vsel %vm424_vm1, %v423_v4, 0.0  ;;  %vm447_vm3 = vcmask 25600   ;;  %p906_p10 = scmp.ne.s32.totalorder %s1144_s11, 1 }
  0x4a   : > { %426 = vadd.xlane.f32.xlu0 %v425_v5  ;;  %v434_v8 = vand.u32 127, %v433_v7  ;;  %v436_v9 = vshrl.u32 %v433_v7, 7 }
  0x4c   : > { %v437_v11 = vsub.s32 %v434_v8, %v436_v9 }
  0x4e   : > { %429 = vadd.xlane.f32.xlu0 %v428_v6  ;;  %v421_v14 = vld [vmem:[#allocation2] sm:$0x3] }
  0xd3   : > { %v427_v10 = vpop.xlane.xlu0 %426 }
  0xd4   : > { %v438_v13 = vrot.slane %v427_v10, %v437_v11 }
  0xd7   : > { %v430_v12 = vpop.xlane.xlu0 %429 }
  0xd8   : > { %v442_v15 = vrot.slane %v430_v12, %v437_v11 }
  0xd9   : > { %452 = sbr.rel (%p906_p10) target bundleno = 1056 (0x420), region = 113 }
  0xda   : > { %v444_v16 = vsel %vm443_vm2, %v442_v15, %v438_v13 }
  0xdb   : > { %v446_v17 = vadd.f32 %v444_v16, %v421_v14 }
  0xdd   : > { %448 = vst.msk [vmem:[#allocation2] sm:$0x3] %vm447_vm3, %v446_v17 }
  0xde   : > { %v455_v18 = vld [vmem:[#allocation4] sm:$0xf]  ;;  %v1157_v20 = vmov 0.0   ;;  %vm1158_vm4 = vmmov 0   ;;  %vm463_vm5 = vcmask 31744   ;;  %v542_v22 = vld [vmem:[%s1374_s3] sm:$0xff] }
  0xdf   : > { %931 = vmatprep.subr.mxu0 %v1157_v20  ;;  %933 = vmatprep.mubr.msk.f32.mxu0 %vm1158_vm4, %v1157_v20  ;;  %v907_v23 = vld [vmem:[%s1373_s2] ss:$0 sm:$0xff]  ;;  %vm550_vm6 = vcmask 64512   ;;  %v910_v30 = vld [vmem:[#allocation7] ss:$0 sm:$0xff]  ;;  %vm724_vm7 = vcmask 1041408  }
  0xe0   : > { %932 = vmatpush3.msk.msra.mxu0 %vm424_vm1, %v455_v18  ;;  %936 = vmatprep.subr.mxu1 %v1157_v20  ;;  %v626_v29 = vld [vmem:[%s1376_s5] sm:$0xf]  ;;  %vm720_vm8 = vcmask 15360  }
  0xe1   : > { %938 = vmatprep.mubr.msk.f32.mxu1 %vm1158_vm4, %v1157_v20  ;;  %941 = vmatprep.subr.mxu0 %v1157_v20  ;;  %v712_v36 = vld [vmem:[%s1378_s7] sm:$0x3] }
  0xe2   : > { %937 = vmatpush3.msra.mxu1 %v542_v22  ;;  %v912_v37 = vld [vmem:[%s1377_s6] ss:$0 sm:$0xff] }
  0xe3   : > { %946 = vmatprep.subr.mxu1 %v1157_v20  ;;  %v915_v43 = vld [vmem:[%s1379_s8] ss:$0 sm:$0xff] }
  0xe4   : > { %v453_v19 = vld [vmem:[#allocation2] sm:$0x3] }
  0xe5   : > { %v454_v21 = vmul.f32 0.00390625, %v453_v19 }
  0xe7   : > { %934 = vmatmul.mubr.msk.f32.vlgmr.msra.gmra.mxu0 %vm463_vm5, %v454_v21 }
  0xe8   : > { %943 = vmatprep.mubr.msk.f32.mxu0 %vm1158_vm4, %v1157_v20  ;;  %942 = vmatpush3.msk.msra.mxu0 %vm424_vm1, %v626_v29 }
 0x1a7   : > { %v536_v24 = vpop.f32.mrf.mxu0 }
 0x1a8   : > { %v537_v25 = vadd.f32 %v907_v23, %v536_v24 }
 0x1a9   : > { %v935_v26 = vpop.f32.mrf.mxu0 }
 0x1aa   : > { %v540_v27 = vmax.f32 %v537_v25, 0.0 }
 0x1ac   : > { %v541_v28 = vmin.f32 %v540_v27, 6.0 }
 0x1ae   : > { %939 = vmatmul.mubr.msk.f32.vlgmr.msra.gmra.mxu1 %vm550_vm6, %v541_v28 }
 0x1af   : > { %948 = vmatprep.mubr.msk.f32.mxu1 %vm1158_vm4, %v1157_v20  ;;  %947 = vmatpush3.msk.msra.mxu1 %vm724_vm7, %v712_v36 }
 0x26e   : > { %v620_v31 = vpop.f32.mrf.mxu1 }
 0x26f   : > { %v621_v32 = vadd.f32 %v910_v30, %v620_v31 }
 0x270   : > { %v940_v33 = vpop.f32.mrf.mxu1 }
 0x271   : > { %v624_v34 = vmax.f32 %v621_v32, 0.0 }
 0x273   : > { %v625_v35 = vmin.f32 %v624_v34, 6.0 }
 0x275   : > { %944 = vmatmul.mubr.msk.f32.vlgmr.msra.gmra.mxu0 %vm463_vm5, %v625_v35 }
 0x335   : > { %v706_v38 = vpop.f32.mrf.mxu0 }
 0x336   : > { %v707_v39 = vadd.f32 %v912_v37, %v706_v38 }
 0x337   : > { %v945_v40 = vpop.f32.mrf.mxu0 }
 0x338   : > { %v710_v41 = vmax.f32 %v707_v39, 0.0 }
 0x33a   : > { %v711_v42 = vmin.f32 %v710_v41, 6.0 }
 0x33c   : > { %949 = vmatmul.mubr.msk.f32.vlgmr.msra.gmra.mxu1 %vm720_vm8, %v711_v42 }
 0x3fc   : > { %v794_v44 = vpop.f32.mrf.mxu1 }
 0x3fd   : > { %v795_v45 = vadd.f32 %v915_v43, %v794_v44 }
 0x3fe   : > { %v950_v46 = vpop.f32.mrf.mxu1 }
 0x3ff   : > { %v918_v47 = vmul.f32 -1.442695, %v795_v45 }
 0x401   : > { %1022 = vpow2.f32 %v918_v47 }
 0x40e   : > { %v1023_v48 = vpop.eup %1022 }
 0x40f   : > { %v801_v49 = vadd.f32 1.0, %v1023_v48 }
 0x411   : > { %1024 = vrcp.f32 %v801_v49 }
 0x41e   : > { %v1025_v50 = vpop.eup %1024 }
 0x41f   : > { %804 = vst [vmem:[#allocation9] sm:$0x3] %v1025_v50 }
 0x420 PF: > { %p1341_p11 = scmp.eq.s32.totalorder %s894_s14, 1  ;;  %s1159_s26 = smov [#allocation9]  }
 0x421   : > { %s814_s22 = sshll.u32 %s1159_s26, 4  ;;  %s815_s22 = int_to_ptr.vmem [resolvable:$true] %s814_s22 }
 0x422   : > { %s1078_s30 = scalar_lea.vmem %s815_s22, 32  ;;  %p1085_p6 = scmp.lt.s32.totalorder %s815_s22, %s815_s22 }
 0x423   : > { %p1079_p2 = scmp.ne.s32.totalorder %s815_s22, %s1078_s30  ;;  %p1086_p9 = scmp.lt.s32.totalorder %s1078_s30, %s1078_s30 }
 0x425   : > { %p1080_p4 = pnand %p1079_p2, %p1341_p11  ;;  %p1087_p12 = por %p1086_p9, %p1085_p6 }
 0x427   : > { %p1081_p5 = pneg %p1080_p4 }
 0x429   : > { %p1088_p13 = pnand %p1087_p12, %p1081_p5 }
 0x42b   : > { %1091 = shalt.err (!%p1088_p13)
}
 0x42c   : > { %960 = dma.vmem_to_hbm [thread:$0]  (%p1341_p11), %s815_s22, 32, %s1380_s9, [#allocation6]  }
 0x42d   : > { %1131 = dma.done.wait (%p1341_p11), [#allocation6], 32  }
 0x42e   : > { %1133 = vsyncadd (%p1341_p11), [#allocation6], 4294967264 }
 0x42f PF: > { %s22_s13 = sadd.s32 1, %s1152_s13   ;;  %s1391_s30 = smov %s1140_s10 }
 0x430   : > { %p19_p1 = scmp.ge.s32.totalorder %s22_s13, 4   ;;  %s1392_s10 = smov %s1262_s21 }
 0x431   : > { %s1393_s11 = smov %s1148_s12  ;;  %s1394_s12 = smov %s1396_s15 }
 0x432   :  { %21 = sbr.rel (!%p19_p1) target bundleno = 5 (0x5), region = 147 }
 0x437   :  { %827 = vsyncpa [#allocation5], 1 }
 0x438   :  { %829 = vsyncpa [#allocation5 + $0x1], 1 }
 0x439   :  { %830 = vsyncpa [#allocation8], 1 }
 0x43a   :  { %831 = vsyncpa [#allocation6], 1 }
 0x43b   :  { %833 = vsyncpa [#allocation6 + $0x1], 1 }

// kernel: tpu_custom_call.1
= control target key start
LH: loop header
LB: loop body
LE: loop exit
PB: predicated region body
PF: predicated region fallthrough
CT: control target
= control target key end

     0   :  { %14 = vsyncpa [#allocation5], 0  ;;  %s1371_s0 = inlined_call_operand.vmem [shape: f32[2,4,256], index: 0, kind: input, shape index: {}]   ;;  %s1372_s1 = inlined_call_operand.hbm [shape: f32[4,8], index: 1, kind: input, shape index: {}]   ;;  %s1373_s2 = inlined_call_operand.vmem [shape: f32[1,8], index: 2, kind: input, shape index: {}]   ;;  %s1374_s3 = inlined_call_operand.vmem [shape: f32[8,4], index: 3, kind: input, shape index: {}]   ;;  %s1375_s4 = inlined_call_operand.hbm [shape: f32[1,4], index: 4, kind: input, shape index: {}]   ;;  %s1376_s5 = inlined_call_operand.vmem [shape: f32[4,2], index: 5, kind: input, shape index: {}]   ;;  %s1377_s6 = inlined_call_operand.vmem [shape: f32[1,2], index: 6, kind: input, shape index: {}]   ;;  %s1378_s7 = inlined_call_operand.vmem [shape: f32[2,128], index: 7, kind: input, shape index: {}]   ;;  %s1379_s8 = inlined_call_operand.vmem [shape: f32[1,128], index: 8, kind: input, shape index: {}]   ;;  %s1380_s9 = inlined_call_operand.hbm [shape: f32[2,128], index: 9, kind: output, shape index: {}]  }
   0x1   :  { %15 = vsyncpa [#allocation8], 0 }
   0x2   :  { %16 = vsyncpa [#allocation6], 0  ;;  %s1210_s30 = smov 0   ;;  %s1212_s10 = smov 0  }
   0x3   :  { %s1214_s11 = smov 0   ;;  %s1216_s12 = smov 0  }
   0x4   :  { %s1218_s13 = smov 0  }
   0x5 LB: > { %s894_s14 = sadd.s32 4294967295, %s1152_s13   ;;  %s31_s15 = sadd.s32 1, %s1148_s12  ;;  %s1152_s13 = sphi %s1218_s13, %s22_s13   ;;  %s1148_s12 = sphi %s1216_s12, %s1394_s12   ;;  %s1144_s11 = sphi %s1214_s11, %s1393_s11   ;;  %s1140_s10 = sphi %s1212_s10, %s1392_s10   ;;  %s1136_s30 = sphi %s1210_s30, %s1391_s30  }
   0x6   : > { %p32_p0 = scmp.ge.s32.totalorder %s31_s15, 2  ;;  %s43_s16 = sadd.s32 1, %s1140_s10 }
   0x7   : > { %p50_p1 = scmp.ne.s32.totalorder %s1140_s10, %s1136_s30  ;;  %p51_p2 = scmp.eq.s32.totalorder %s1152_s13, 0 }
   0x8   : > { %s1396_s15 = smov (%p32_p0, %s31_s15), 0  ;;  %p895_p4 = scmp.ge.s32.totalorder %s1152_s13, 1 }
   0x9   : > { %p1243_p3 = por %p51_p2, %p50_p1  ;;  %s39_s18 = ssub.s32 %s1148_s12, %s1396_s15 }
   0xa   : > { %p261_p5 = scmp.lt.s32.totalorder %s1152_s13, 3  ;;  %p41_p6 = scmp.eq.s32.totalorder %s39_s18, 0 }
   0xb   : > { %p1257_p8 = scmp.eq.s32.totalorder %s894_s14, 0  ;;  %s1154_s22 = smov [#allocation4]  }
   0xc   : > { %p1251_p7 = pnand %p895_p4, %p261_p5  ;;  %s274_s23 = sshll.u32 %s1154_s22, 4  ;;  %s275_s23 = int_to_ptr.vmem [resolvable:$true] %s274_s23 }
   0xd   : > { %s1386_s20 = scalar_select %p1257_p8, 1, 0 }
   0xe   : > { %s1385_s19 = scalar_select %p1251_p7, 1, 0 }
   0xf   : > { %s1262_s21 = scalar_select %p41_p6, %s1140_s10, %s43_s16  }
  0x10   : > { %p963_p9 = pneg %p1251_p7  ;;  %s1155_s25 = smov [#allocation7]  }
  0x11   : > { %s291_s26 = sshll.u32 %s1155_s25, 4  ;;  %s1037_s27 = scalar_lea.vmem %s275_s23, 64  ;;  %s292_s26 = int_to_ptr.vmem [resolvable:$true] %s291_s26 }
  0x12   : > { %p1268_p10 = pnand %p1257_p8, %p963_p9  ;;  %p1038_p12 = scmp.ne.s32.totalorder %s275_s23, %s1037_s27 }
  0x13   : > { %p1045_p1 = scmp.lt.s32.totalorder %s275_s23, %s275_s23  ;;  %p1046_p2 = scmp.lt.s32.totalorder %s1037_s27, %s1037_s27 }
  0x14   : > { %p1028_p11 = pneg %p1268_p10 }
  0x15   : > { %p1047_p4 = por %p1046_p2, %p1045_p1 }
  0x16   : > { %p1040_p13 = pnand %p1038_p12, %p1028_p11 }
  0x18   : > { %p1041_p0 = pneg %p1040_p13 }
  0x1a   : > { %p1048_p5 = pnand %p1047_p4, %p1041_p0 }
  0x1c   : > { %1051 = shalt.err (!%p1048_p5)
}
  0x1d   : > { %966 = dma.hbm_to_vmem [thread:$0]  (!%p1268_p10), %s1372_s1, 64, %s275_s23, [#allocation5]  }
  0x1e   : > { %s1063_s16 = scalar_lea.vmem %s292_s26, 16  ;;  %s1070_s18 = scalar_lea.vmem %s292_s26, 32 }
  0x1f   : > { %p1064_p6 = scmp.ne.s32.totalorder %s292_s26, %s1063_s16  ;;  %p1071_p12 = scmp.lt.s32.totalorder %s292_s26, %s292_s26 }
  0x20   : > { %p1072_p13 = scmp.lt.s32.totalorder %s1070_s18, %s1063_s16 }
  0x21   : > { %p1066_p9 = pnand %p1064_p6, %p1028_p11 }
  0x22   : > { %p1073_p7 = por %p1072_p13, %p1071_p12 }
  0x23   : > { %p1067_p8 = pneg %p1066_p9 }
  0x25   : > { %p1074_p1 = pnand %p1073_p7, %p1067_p8 }
  0x27   : > { %1077 = shalt.err (!%p1074_p1)
}
  0x28   : > { %969 = dma.hbm_to_vmem [thread:$0]  (!%p1268_p10), %s1375_s4, 16, %s292_s26, [#allocation8]  }
  0x29   : > { %p898_p0 = scmp.ge.s32.totalorder %s1152_s13, 2 }
  0x2b   : > { %310 = sbr.rel (%p898_p0) target bundleno = 53 (0x35), region = 48 }
  0x30   : > { %313 = sbr.rel (!%p1243_p3) target bundleno = 53 (0x35), region = 52  ;;  %s315_s23 = sand.u32 (%p1243_p3), 1, %s1140_s10  }
  0x31   : > { %s900_s27 = sshll.u32 (%p1243_p3), %s1148_s12, 2  ;;  %s899_s28 = sshll.u32 (%p1243_p3), %s315_s23, 3 }
  0x32   : > { %s322_s18 = scalar_lea.vmem (%p1243_p3), %s1371_s0, %s900_s27  ;;  %s317_s24 = scalar_lea.vmem (%p1243_p3), [#allocation3], %s899_s28 }
  0x33   : > { %v339_v0 = vld [vmem:[%s322_s18] sm:$0xf] (%p1243_p3)  ;;  %v341_v1 = vld [vmem:[%s322_s18 + $0x8] sm:$0xf] (%p1243_p3) }
  0x34   : > { %340 = vst [vmem:[%s317_s24] sm:$0xf] (%p1243_p3), %v339_v0  ;;  %342 = vst [vmem:[%s317_s24 + $0x4] sm:$0xf] (%p1243_p3), %v341_v1 }
  0x35 PF: > { %p1388_p7 = scmp.ne.s32.totalorder %s1385_s19, 0 }
  0x36   : > { %s376_s17 = sand.u32 (!%p1388_p7), 1, %s1136_s30   ;;  %p1389_p3 = scmp.ne.s32.totalorder (!%p1388_p7), %s1386_s20, 0 }
  0x37   : > { %373 = sbr.rel (%p1388_p7) target bundleno = 1071 (0x42f), region = 93  ;;  %s902_s26 = sshll.u32 (!%p1388_p7), %s376_s17, 3 }
  0x38   : > { %s378_s22 = scalar_lea.vmem (!%p1388_p7), [#allocation3], %s902_s26 }
  0x3c   : > { %1123 = dma.done.wait (%p1389_p3), [#allocation5], 64  }
  0x3d   : > { %1125 = vsyncadd (%p1389_p3), [#allocation5], 4294967232 }
  0x3e   : > { %1127 = dma.done.wait (%p1389_p3), [#allocation8], 16  }
  0x3f   : > { %1129 = vsyncadd (%p1389_p3), [#allocation8], 4294967280  ;;  %p905_p8 = scmp.ne.s32.totalorder %s1144_s11, 0 }
  0x41   : > { %418 = sbr.rel (%p905_p8) target bundleno = 72 (0x48), region = 109 }
  0x46   : > { %vm419_vm0 = vcmask 25600   ;;  %v1156_v2 = vmov 0.0  }
  0x47   : > { %420 = vst.msk [vmem:[#allocation2] sm:$0x3] %vm419_vm0, %v1156_v2 }
  0x48 PF: > { %v422_v3 = vld [vmem:[%s378_s22] sm:$0xf]  ;;  %vm424_vm1 = vcmask 1043456   ;;  %v423_v4 = vld [vmem:[%s378_s22 + $0x4] sm:$0xf]  ;;  %v433_v7 = vlaneseq  ;;  %vm443_vm2 = vcmask 1041409  }
  0x49   : > { %v425_v5 = vsel %vm424_vm1, %v422_v3, 0.0  ;;  %v428_v6 = vsel %vm424_vm1, %v423_v4, 0.0  ;;  %vm447_vm3 = vcmask 25600   ;;  %p906_p10 = scmp.ne.s32.totalorder %s1144_s11, 1 }
  0x4a   : > { %426 = vadd.xlane.f32.xlu0 %v425_v5  ;;  %v434_v8 = vand.u32 127, %v433_v7  ;;  %v436_v9 = vshrl.u32 %v433_v7, 7 }
  0x4c   : > { %v437_v11 = vsub.s32 %v434_v8, %v436_v9 }
  0x4e   : > { %429 = vadd.xlane.f32.xlu0 %v428_v6  ;;  %v421_v14 = vld [vmem:[#allocation2] sm:$0x3] }
  0xd3   : > { %v427_v10 = vpop.xlane.xlu0 %426 }
  0xd4   : > { %v438_v13 = vrot.slane %v427_v10, %v437_v11 }
  0xd7   : > { %v430_v12 = vpop.xlane.xlu0 %429 }
  0xd8   : > { %v442_v15 = vrot.slane %v430_v12, %v437_v11 }
  0xd9   : > { %452 = sbr.rel (%p906_p10) target bundleno = 1056 (0x420), region = 113 }
  0xda   : > { %v444_v16 = vsel %vm443_vm2, %v442_v15, %v438_v13 }
  0xdb   : > { %v446_v17 = vadd.f32 %v444_v16, %v421_v14 }
  0xdd   : > { %448 = vst.msk [vmem:[#allocation2] sm:$0x3] %vm447_vm3, %v446_v17 }
  0xde   : > { %v455_v18 = vld [vmem:[#allocation4] sm:$0xf]  ;;  %v1157_v20 = vmov 0.0   ;;  %vm1158_vm4 = vmmov 0   ;;  %vm463_vm5 = vcmask 31744   ;;  %v542_v22 = vld [vmem:[%s1374_s3] sm:$0xff] }
  0xdf   : > { %931 = vmatprep.subr.mxu0 %v1157_v20  ;;  %933 = vmatprep.mubr.msk.f32.mxu0 %vm1158_vm4, %v1157_v20  ;;  %v907_v23 = vld [vmem:[%s1373_s2] ss:$0 sm:$0xff]  ;;  %vm550_vm6 = vcmask 64512   ;;  %v910_v30 = vld [vmem:[#allocation7] ss:$0 sm:$0xff]  ;;  %vm724_vm7 = vcmask 1041408  }
  0xe0   : > { %932 = vmatpush3.msk.msra.mxu0 %vm424_vm1, %v455_v18  ;;  %936 = vmatprep.subr.mxu1 %v1157_v20  ;;  %v626_v29 = vld [vmem:[%s1376_s5] sm:$0xf]  ;;  %vm720_vm8 = vcmask 15360  }
  0xe1   : > { %938 = vmatprep.mubr.msk.f32.mxu1 %vm1158_vm4, %v1157_v20  ;;  %941 = vmatprep.subr.mxu0 %v1157_v20  ;;  %v712_v36 = vld [vmem:[%s1378_s7] sm:$0x3] }
  0xe2   : > { %937 = vmatpush3.msra.mxu1 %v542_v22  ;;  %v912_v37 = vld [vmem:[%s1377_s6] ss:$0 sm:$0xff] }
  0xe3   : > { %946 = vmatprep.subr.mxu1 %v1157_v20  ;;  %v915_v43 = vld [vmem:[%s1379_s8] ss:$0 sm:$0xff] }
  0xe4   : > { %v453_v19 = vld [vmem:[#allocation2] sm:$0x3] }
  0xe5   : > { %v454_v21 = vmul.f32 0.00390625, %v453_v19 }
  0xe7   : > { %934 = vmatmul.mubr.msk.f32.vlgmr.msra.gmra.mxu0 %vm463_vm5, %v454_v21 }
  0xe8   : > { %943 = vmatprep.mubr.msk.f32.mxu0 %vm1158_vm4, %v1157_v20  ;;  %942 = vmatpush3.msk.msra.mxu0 %vm424_vm1, %v626_v29 }
 0x1a7   : > { %v536_v24 = vpop.f32.mrf.mxu0 }
 0x1a8   : > { %v537_v25 = vadd.f32 %v907_v23, %v536_v24 }
 0x1a9   : > { %v935_v26 = vpop.f32.mrf.mxu0 }
 0x1aa   : > { %v540_v27 = vmax.f32 %v537_v25, 0.0 }
 0x1ac   : > { %v541_v28 = vmin.f32 %v540_v27, 6.0 }
 0x1ae   : > { %939 = vmatmul.mubr.msk.f32.vlgmr.msra.gmra.mxu1 %vm550_vm6, %v541_v28 }
 0x1af   : > { %948 = vmatprep.mubr.msk.f32.mxu1 %vm1158_vm4, %v1157_v20  ;;  %947 = vmatpush3.msk.msra.mxu1 %vm724_vm7, %v712_v36 }
 0x26e   : > { %v620_v31 = vpop.f32.mrf.mxu1 }
 0x26f   : > { %v621_v32 = vadd.f32 %v910_v30, %v620_v31 }
 0x270   : > { %v940_v33 = vpop.f32.mrf.mxu1 }
 0x271   : > { %v624_v34 = vmax.f32 %v621_v32, 0.0 }
 0x273   : > { %v625_v35 = vmin.f32 %v624_v34, 6.0 }
 0x275   : > { %944 = vmatmul.mubr.msk.f32.vlgmr.msra.gmra.mxu0 %vm463_vm5, %v625_v35 }
 0x335   : > { %v706_v38 = vpop.f32.mrf.mxu0 }
 0x336   : > { %v707_v39 = vadd.f32 %v912_v37, %v706_v38 }
 0x337   : > { %v945_v40 = vpop.f32.mrf.mxu0 }
 0x338   : > { %v710_v41 = vmax.f32 %v707_v39, 0.0 }
 0x33a   : > { %v711_v42 = vmin.f32 %v710_v41, 6.0 }
 0x33c   : > { %949 = vmatmul.mubr.msk.f32.vlgmr.msra.gmra.mxu1 %vm720_vm8, %v711_v42 }
 0x3fc   : > { %v794_v44 = vpop.f32.mrf.mxu1 }
 0x3fd   : > { %v795_v45 = vadd.f32 %v915_v43, %v794_v44 }
 0x3fe   : > { %v950_v46 = vpop.f32.mrf.mxu1 }
 0x3ff   : > { %v918_v47 = vmul.f32 -1.442695, %v795_v45 }
 0x401   : > { %1022 = vpow2.f32 %v918_v47 }
 0x40e   : > { %v1023_v48 = vpop.eup %1022 }
 0x40f   : > { %v801_v49 = vadd.f32 1.0, %v1023_v48 }
 0x411   : > { %1024 = vrcp.f32 %v801_v49 }
 0x41e   : > { %v1025_v50 = vpop.eup %1024 }
 0x41f   : > { %804 = vst [vmem:[#allocation9] sm:$0x3] %v1025_v50 }
 0x420 PF: > { %p1341_p11 = scmp.eq.s32.totalorder %s894_s14, 1  ;;  %s1159_s26 = smov [#allocation9]  }
 0x421   : > { %s814_s22 = sshll.u32 %s1159_s26, 4  ;;  %s815_s22 = int_to_ptr.vmem [resolvable:$true] %s814_s22 }
 0x422   : > { %s1078_s30 = scalar_lea.vmem %s815_s22, 32  ;;  %p1085_p6 = scmp.lt.s32.totalorder %s815_s22, %s815_s22 }
 0x423   : > { %p1079_p2 = scmp.ne.s32.totalorder %s815_s22, %s1078_s30  ;;  %p1086_p9 = scmp.lt.s32.totalorder %s1078_s30, %s1078_s30 }
 0x425   : > { %p1080_p4 = pnand %p1079_p2, %p1341_p11  ;;  %p1087_p12 = por %p1086_p9, %p1085_p6 }
 0x427   : > { %p1081_p5 = pneg %p1080_p4 }
 0x429   : > { %p1088_p13 = pnand %p1087_p12, %p1081_p5 }
 0x42b   : > { %1091 = shalt.err (!%p1088_p13)
}
 0x42c   : > { %960 = dma.vmem_to_hbm [thread:$0]  (%p1341_p11), %s815_s22, 32, %s1380_s9, [#allocation6]  }
 0x42d   : > { %1131 = dma.done.wait (%p1341_p11), [#allocation6], 32  }
 0x42e   : > { %1133 = vsyncadd (%p1341_p11), [#allocation6], 4294967264 }
 0x42f PF: > { %s22_s13 = sadd.s32 1, %s1152_s13   ;;  %s1391_s30 = smov %s1140_s10 }
 0x430   : > { %p19_p1 = scmp.ge.s32.totalorder %s22_s13, 4   ;;  %s1392_s10 = smov %s1262_s21 }
 0x431   : > { %s1393_s11 = smov %s1148_s12  ;;  %s1394_s12 = smov %s1396_s15 }
 0x432   :  { %21 = sbr.rel (!%p19_p1) target bundleno = 5 (0x5), region = 147 }
 0x437   :  { %827 = vsyncpa [#allocation5], 1 }
 0x438   :  { %829 = vsyncpa [#allocation5 + $0x1], 1 }
 0x439   :  { %830 = vsyncpa [#allocation8], 1 }
 0x43a   :  { %831 = vsyncpa [#allocation6], 1 }
 0x43b   :  { %833 = vsyncpa [#allocation6 + $0x1], 1 }

</bundles_post_ra>
